<compile_context>
chip_gen: v7x
topology: tpu7x:2x2x1
jax: 0.10.0
libtpu: 0.0.40
codegen_flags: <defaults>
</compile_context>

<pallas_src>
import math

import jax
import jax.numpy as jnp
from jax import lax
from jax.experimental import pallas as pl
from jax.experimental.pallas import tpu as pltpu

_SQRT1_2 = 1.0 / math.sqrt(2.0)
_LN_EPS = 1e-12


def _round_up(a, b):
    return (a + b - 1) // b * b


def _dense_gelu_ln(x, wd, bd, gamma, beta):
    """dense -> erf-GELU -> LayerNorm(eps=1e-12).

    Matmul operands stay in their storage dtype (bf16 in production); the MXU
    accumulates in f32 via preferred_element_type.  All elementwise epilogue
    math is f32 (v5e has no bf16 VPU/EUP, and it matches the PyTorch ref)."""
    h = lax.dot_general(x, wd, (((1,), (1,)), ((), ())),      # x @ Wd^T
                        preferred_element_type=jnp.float32)
    h = h + bd.astype(jnp.float32)
    h = h * 0.5 * (1.0 + lax.erf(h * _SQRT1_2))
    mean = jnp.mean(h, axis=-1, keepdims=True)
    c = h - mean
    var = jnp.mean(c * c, axis=-1, keepdims=True)
    h = c * lax.rsqrt(var + _LN_EPS)
    return h * gamma.astype(jnp.float32) + beta.astype(jnp.float32)


# ---------------------------------------------------------------------------
# Path A: fused, activation-stationary.  Grid = (row tiles [parallel],
# vocab tiles [arbitrary]); h is computed once per row tile at j == 0 and
# cached in VMEM scratch.  NOTE: the vocab axis must stay "arbitrary" -- the
# pl.when(j == 0) guard relies on sequential j execution per core.
# ---------------------------------------------------------------------------
def _fused_kernel(x_ref, wd_ref, bd_ref, g_ref, b_ref, wdec_ref, bdec_ref,
                  o_ref, h_scratch):
    @pl.when(pl.program_id(1) == 0)
    def _():
        h = _dense_gelu_ln(x_ref[...], wd_ref[...], bd_ref[...],
                           g_ref[...], b_ref[...])
        h_scratch[...] = h.astype(h_scratch.dtype)

    # (tm, D) x (tn, D) contracting on D  ==  h @ Wemb_slab^T  (NT on the MXU)
    logits = lax.dot_general(h_scratch[...], wdec_ref[...],
                             (((1,), (1,)), ((), ())),
                             preferred_element_type=jnp.float32)
    logits = logits + bdec_ref[...].astype(jnp.float32)
    o_ref[...] = logits.astype(o_ref.dtype)


# ---------------------------------------------------------------------------
# Path B: weight-stationary (large N).  Pass 1 materializes h for all rows;
# pass 2 streams each (tn, D) embedding slab exactly once (row tiles inner).
# ---------------------------------------------------------------------------
def _epilogue_kernel(x_ref, wd_ref, bd_ref, g_ref, b_ref, h_ref):
    h = _dense_gelu_ln(x_ref[...], wd_ref[...], bd_ref[...],
                       g_ref[...], b_ref[...])
    h_ref[...] = h.astype(h_ref.dtype)


def _decoder_kernel(h_ref, wdec_ref, bdec_ref, o_ref):
    logits = lax.dot_general(h_ref[...], wdec_ref[...],
                             (((1,), (1,)), ((), ())),
                             preferred_element_type=jnp.float32)
    o_ref[...] = (logits + bdec_ref[...].astype(jnp.float32)).astype(o_ref.dtype)


def bartpho_lm_head(features, w_dense, b_dense, gamma, beta, emb_weight, b_dec,
                    *, tm=512, tn=2048, compute_dtype=jnp.bfloat16,
                    out_dtype=None, weight_stationary=None,
                    vmem_budget_bytes=None):
    """BartPhoLMHead forward.

    features: [B, S, D]; w_dense: [D, D] (out, in); emb_weight: [V, D] (tied).

    compute_dtype: storage dtype for weights/activations fed to the MXU
      (default bf16 -- halves weight DMA and doubles MXU rate on every chip;
      accumulation and the GELU/LN epilogue stay f32).
    out_dtype: logits dtype (default = features.dtype).  Pass jnp.bfloat16 in
      production: the N*V logits writeback is the largest HBM stream.
    weight_stationary: None = auto (byte-count heuristic).  True forces the
      two-pass path (best for large-N prefill/training; also lets v7x decode
      shard the vocab axis across both TensorCores).
    Tile guidance (bf16): tm=512 on all generations; tn=2048-4096 on
      v5e/v6e (128 MiB VMEM), tn=2048 on v7x (64 MiB VMEM).  Tiles are
      auto-shrunk to fit the queried VMEM capacity.
    """
    B, S, D = features.shape
    V = emb_weight.shape[0]
    N = B * S
    compute_dtype = jnp.dtype(compute_dtype)
    out_dtype = features.dtype if out_dtype is None else jnp.dtype(out_dtype)
    cb = compute_dtype.itemsize
    ob = out_dtype.itemsize

    # ---- VMEM budget & tile sizing -------------------------------------
    if vmem_budget_bytes is None:
        try:
            vmem_budget_bytes = int(pltpu.get_tpu_info().vmem_capacity_bytes)
        except Exception:
            vmem_budget_bytes = 64 * 1024 * 1024   # v7x-safe fallback
    budget = int(0.70 * vmem_budget_bytes)         # headroom for compiler scratch

    # min sublane tile of 16 rows (safe for bf16-packed activations)
    tm_eff = min(tm, _round_up(N, 16))
    tn_eff = min(tn, _round_up(V, 128))

    def _fused_vmem_bytes(tm_, tn_):
        return (2 * tm_ * D * cb        # x row tile (double-buffered)
                + 2 * D * D * cb        # dense W (resident, still 2 bufs)
                + 6 * D * 4             # bd, gamma, beta (f32)
                + 2 * tn_ * D * cb      # embedding slab
                + 2 * tn_ * 4           # decoder bias slab
                + 2 * tm_ * tn_ * ob    # output tile
                + tm_ * D * cb)         # h scratch

    while _fused_vmem_bytes(tm_eff, tn_eff) > budget and tn_eff > 256:
        tn_eff = max(128, _round_up(tn_eff // 2, 128))
    while _fused_vmem_bytes(tm_eff, tn_eff) > budget and tm_eff > 16:
        tm_eff = max(16, _round_up(tm_eff // 2, 16))

    n_pad = _round_up(N, tm_eff)
    v_pad = _round_up(V, tn_eff)
    n_rt = n_pad // tm_eff
    n_vt = v_pad // tn_eff

    if weight_stationary is None:
        # fused re-reads Wemb (n_rt - 1) extra times; weight-stationary
        # re-reads h (n_vt + 1) times.  Compare the two extra streams.
        weight_stationary = (n_rt - 1) * v_pad > (n_vt + 1) * n_pad

    vmem_limit = int(min(max(_fused_vmem_bytes(tm_eff, tn_eff) * 1.25 + (2 << 20),
                             32 << 20),
                         vmem_budget_bytes))

    # ---- operand prep (cast to compute dtype, pad to tile multiples) ----
    x2d = features.reshape(N, D).astype(compute_dtype)
    if n_pad != N:
        x2d = jnp.pad(x2d, ((0, n_pad - N), (0, 0)))
    wd = w_dense.astype(compute_dtype)                      # [D_out, D_in]
    wdec = emb_weight.astype(compute_dtype)                 # [V, D] -- no transpose
    bdec = b_dec.astype(jnp.float32)
    if v_pad != V:
        wdec = jnp.pad(wdec, ((0, v_pad - V), (0, 0)))
        bdec = jnp.pad(bdec, ((0, v_pad - V),))
    bdec = bdec.reshape(1, v_pad)
    bd = b_dense.astype(jnp.float32).reshape(1, D)
    g2 = gamma.astype(jnp.float32).reshape(1, D)
    be2 = beta.astype(jnp.float32).reshape(1, D)

    if not weight_stationary:
        # -------- Path A: fused, activation-stationary -------------------
        out2d = pl.pallas_call(
            _fused_kernel,
            out_shape=jax.ShapeDtypeStruct((n_pad, v_pad), out_dtype),
            grid_spec=pltpu.PrefetchScalarGridSpec(
                num_scalar_prefetch=0,
                grid=(n_rt, n_vt),
                in_specs=[
                    pl.BlockSpec((tm_eff, D), lambda i, j: (i, 0)),   # x row tile
                    pl.BlockSpec((D, D), lambda i, j: (0, 0)),        # dense W
                    pl.BlockSpec((1, D), lambda i, j: (0, 0)),        # dense bias
                    pl.BlockSpec((1, D), lambda i, j: (0, 0)),        # LN gamma
                    pl.BlockSpec((1, D), lambda i, j: (0, 0)),        # LN beta
                    pl.BlockSpec((tn_eff, D), lambda i, j: (j, 0)),   # emb slab
                    pl.BlockSpec((1, tn_eff), lambda i, j: (0, j)),   # dec bias
                ],
                out_specs=pl.BlockSpec((tm_eff, tn_eff), lambda i, j: (i, j)),
                scratch_shapes=[pltpu.VMEM((tm_eff, D), compute_dtype)],
            ),
            compiler_params=pltpu.CompilerParams(
                dimension_semantics=("parallel", "arbitrary"),
                vmem_limit_bytes=vmem_limit,
            ),
        )(x2d, wd, bd, g2, be2, wdec, bdec)
    else:
        # -------- Path B: weight-stationary (two passes) ------------------
        # Pass 1: h = LN(GELU(dense(x)))   -- tiny (N, D) intermediate.
        h2d = pl.pallas_call(
            _epilogue_kernel,
            out_shape=jax.ShapeDtypeStruct((n_pad, D), compute_dtype),
            grid_spec=pltpu.PrefetchScalarGridSpec(
                num_scalar_prefetch=0,
                grid=(n_rt,),
                in_specs=[
                    pl.BlockSpec((tm_eff, D), lambda i: (i, 0)),
                    pl.BlockSpec((D, D), lambda i: (0, 0)),
                    pl.BlockSpec((1, D), lambda i: (0, 0)),
                    pl.BlockSpec((1, D), lambda i: (0, 0)),
                    pl.BlockSpec((1, D), lambda i: (0, 0)),
                ],
                out_specs=pl.BlockSpec((tm_eff, D), lambda i: (i, 0)),
            ),
            compiler_params=pltpu.CompilerParams(
                dimension_semantics=("parallel",),
                vmem_limit_bytes=vmem_limit,
            ),
        )(x2d, wd, bd, g2, be2)

        # Pass 2: decoder with row tiles as the INNER grid axis -> the (tn, D)
        # embedding slab index is constant across inner steps, so each slab is
        # DMA'd from HBM exactly once; h (small) is re-streamed instead.
        out2d = pl.pallas_call(
            _decoder_kernel,
            out_shape=jax.ShapeDtypeStruct((n_pad, v_pad), out_dtype),
            grid_spec=pltpu.PrefetchScalarGridSpec(
                num_scalar_prefetch=0,
                grid=(n_vt, n_rt),
                in_specs=[
                    pl.BlockSpec((tm_eff, D), lambda j, i: (i, 0)),   # h row tile
                    pl.BlockSpec((tn_eff, D), lambda j, i: (j, 0)),   # emb slab
                    pl.BlockSpec((1, tn_eff), lambda j, i: (0, j)),   # dec bias
                ],
                out_specs=pl.BlockSpec((tm_eff, tn_eff), lambda j, i: (i, j)),
            ),
            compiler_params=pltpu.CompilerParams(
                dimension_semantics=("parallel", "arbitrary"),
                vmem_limit_bytes=vmem_limit,
            ),
        )(h2d, wdec, bdec)

    return out2d[:N, :V].reshape(B, S, V)


def _reference(features, w_dense, b_dense, gamma, beta, emb_weight, b_dec):
    x = features.astype(jnp.float32)
    h = x @ w_dense.T + b_dense
    h = h * 0.5 * (1.0 + lax.erf(h / jnp.sqrt(2.0)))
    mean = jnp.mean(h, axis=-1, keepdims=True)
    var = jnp.mean((h - mean) ** 2, axis=-1, keepdims=True)
    h = (h - mean) / jnp.sqrt(var + 1e-12) * gamma + beta
    return h @ emb_weight.T + b_dec


if __name__ == "__main__":
    # Small shapes consistent with the module: batch=2, seq=8, d_model=32, vocab=64
    B, S, D, V = 2, 8, 32, 64

    key = jax.random.PRNGKey(0)
    k_feat, k_wd, k_bd, k_g, k_be, k_emb = jax.random.split(key, 6)

    features = jax.random.normal(k_feat, (B, S, D), dtype=jnp.float32)
    w_dense = jax.random.normal(k_wd, (D, D), dtype=jnp.float32) * 0.02     # [out, in]
    b_dense = jax.random.normal(k_bd, (D,), dtype=jnp.float32) * 0.02
    gamma = jnp.ones((D,), dtype=jnp.float32) + 0.1 * jax.random.normal(k_g, (D,))
    beta = 0.1 * jax.random.normal(k_be, (D,), dtype=jnp.float32)
    emb_weight = jax.random.normal(k_emb, (V, D), dtype=jnp.float32) * 0.02  # tied [V, D]
    b_dec = jnp.zeros((V,), dtype=jnp.float32)  # decoder.bias initialized to zeros

    args = (features, w_dense, b_dense, gamma, beta, emb_weight, b_dec)
    ref = _reference(*args)

    # 1) fused (activation-stationary) path, f32 end-to-end -> tight check.
    out_fused = bartpho_lm_head(*args, compute_dtype=jnp.float32,
                                weight_stationary=False)
    out_fused = jax.block_until_ready(out_fused)
    assert out_fused.shape == (B, S, V)
    assert jnp.allclose(out_fused, ref, atol=3e-4, rtol=3e-4), "fused path mismatch"

    # 2) weight-stationary (two-pass) path, f32 end-to-end -> tight check.
    out_ws = bartpho_lm_head(*args, compute_dtype=jnp.float32,
                             weight_stationary=True)
    out_ws = jax.block_until_ready(out_ws)
    assert out_ws.shape == (B, S, V)
    assert jnp.allclose(out_ws, ref, atol=3e-4, rtol=3e-4), "weight-stationary mismatch"

    # 3) production defaults: bf16 weights/activations + bf16 logits -> loose check.
    out_bf16 = bartpho_lm_head(*args, out_dtype=jnp.bfloat16)
    out_bf16 = jax.block_until_ready(out_bf16).astype(jnp.float32)
    assert out_bf16.shape == (B, S, V)
    assert jnp.allclose(out_bf16, ref, atol=0.05, rtol=0.05), "bf16 path mismatch"

    print("KERNEL_OK")
</pallas_src>

<mosaic_0001>
module attributes {stable_mosaic.version = 11 : i64} {
  func.func @_fused_kernel(%arg0: i32, %arg1: i32, %arg2: memref<16x32xf32, #tpu.memory_space<vmem>>, %arg3: memref<32x32xf32, #tpu.memory_space<vmem>>, %arg4: memref<1x32xf32, #tpu.memory_space<vmem>>, %arg5: memref<1x32xf32, #tpu.memory_space<vmem>>, %arg6: memref<1x32xf32, #tpu.memory_space<vmem>>, %arg7: memref<128x32xf32, #tpu.memory_space<vmem>>, %arg8: memref<1x128xf32, #tpu.memory_space<vmem>>, %arg9: memref<16x128xf32, #tpu.memory_space<vmem>>, %arg10: memref<16x32xf32, #tpu.memory_space<vmem>>) attributes {dimension_semantics = [#tpu.dimension_semantics<parallel>, #tpu.dimension_semantics<arbitrary>], iteration_bounds = array<i64: 1, 1>, scalar_prefetch = 0 : i64, scratch_operands = 1 : i64, tpu.core_type = #tpu.core_type<tc>, window_params = [{transform_indices = @transform_0, window_bounds = array<i64: 16, 32>}, {pipeline_mode = #tpu.pipeline_mode<synchronous>, transform_indices = @transform_1, window_bounds = array<i64: 32, 32>}, {pipeline_mode = #tpu.pipeline_mode<synchronous>, transform_indices = @transform_2, window_bounds = array<i64: 1, 32>}, {pipeline_mode = #tpu.pipeline_mode<synchronous>, transform_indices = @transform_3, window_bounds = array<i64: 1, 32>}, {pipeline_mode = #tpu.pipeline_mode<synchronous>, transform_indices = @transform_4, window_bounds = array<i64: 1, 32>}, {transform_indices = @transform_5, window_bounds = array<i64: 128, 32>}, {transform_indices = @transform_6, window_bounds = array<i64: 1, 128>}, {transform_indices = @transform_7, window_bounds = array<i64: 16, 128>}]} {
    %c0_i32 = arith.constant 0 : i32
    %0 = arith.cmpi eq, %arg1, %c0_i32 : i32
    %1 = arith.extui %0 : i1 to i32
    %c0_i32_0 = arith.constant 0 : i32
    %2 = arith.cmpi ne, %1, %c0_i32_0 : i32
    scf.if %2 {
      %c0_8 = arith.constant 0 : index
      %c0_9 = arith.constant 0 : index
      %10 = vector.load %arg2[%c0_8, %c0_9] : memref<16x32xf32, #tpu.memory_space<vmem>>, vector<16x32xf32>
      %c0_10 = arith.constant 0 : index
      %c0_11 = arith.constant 0 : index
      %11 = vector.load %arg3[%c0_10, %c0_11] : memref<32x32xf32, #tpu.memory_space<vmem>>, vector<32x32xf32>
      %c0_12 = arith.constant 0 : index
      %c0_13 = arith.constant 0 : index
      %12 = vector.load %arg4[%c0_12, %c0_13] : memref<1x32xf32, #tpu.memory_space<vmem>>, vector<1x32xf32>
      %c0_14 = arith.constant 0 : index
      %c0_15 = arith.constant 0 : index
      %13 = vector.load %arg5[%c0_14, %c0_15] : memref<1x32xf32, #tpu.memory_space<vmem>>, vector<1x32xf32>
      %c0_16 = arith.constant 0 : index
      %c0_17 = arith.constant 0 : index
      %14 = vector.load %arg6[%c0_16, %c0_17] : memref<1x32xf32, #tpu.memory_space<vmem>>, vector<1x32xf32>
      %cst_18 = arith.constant dense<0.000000e+00> : vector<16x32xf32>
      %15 = tpu.matmul %10, %11, %cst_18 {dimension_numbers = #tpu.dot_dimension_numbers<[1], [1], [0], [0], [0, 0, 1, 0], [], []>} : vector<16x32xf32>, vector<32x32xf32>, vector<16x32xf32> -> vector<16x32xf32>
      %16 = vector.broadcast %12 : vector<1x32xf32> to vector<16x32xf32>
      %17 = arith.addf %15, %16 : vector<16x32xf32>
      %cst_19 = arith.constant 5.000000e-01 : f32
      %18 = vector.broadcast %cst_19 : f32 to vector<16x32xf32>
      %19 = arith.mulf %17, %18 : vector<16x32xf32>
      %cst_20 = arith.constant 0.707106769 : f32
      %20 = vector.broadcast %cst_20 : f32 to vector<16x32xf32>
      %21 = arith.mulf %17, %20 : vector<16x32xf32>
      %22 = math.erf %21 : vector<16x32xf32>
      %cst_21 = arith.constant 1.000000e+00 : f32
      %23 = vector.broadcast %cst_21 : f32 to vector<16x32xf32>
      %24 = arith.addf %23, %22 : vector<16x32xf32>
      %25 = arith.mulf %19, %24 : vector<16x32xf32>
      %cst_22 = arith.constant dense<0.000000e+00> : vector<16xf32>
      %26 = vector.multi_reduction <add>, %25, %cst_22 [1] : vector<16x32xf32> to vector<16xf32>
      %27 = vector.shape_cast %26 : vector<16xf32> to vector<16x1xf32>
      %cst_23 = arith.constant 3.200000e+01 : f32
      %28 = vector.broadcast %cst_23 : f32 to vector<16x1xf32>
      %29 = arith.divf %27, %28 : vector<16x1xf32>
      %30 = vector.broadcast %29 : vector<16x1xf32> to vector<16x32xf32>
      %31 = arith.subf %25, %30 : vector<16x32xf32>
      %32 = arith.mulf %31, %31 : vector<16x32xf32>
      %cst_24 = arith.constant dense<0.000000e+00> : vector<16xf32>
      %33 = vector.multi_reduction <add>, %32, %cst_24 [1] : vector<16x32xf32> to vector<16xf32>
      %34 = vector.shape_cast %33 : vector<16xf32> to vector<16x1xf32>
      %cst_25 = arith.constant 3.200000e+01 : f32
      %35 = vector.broadcast %cst_25 : f32 to vector<16x1xf32>
      %36 = arith.divf %34, %35 : vector<16x1xf32>
      %cst_26 = arith.constant 9.99999996E-13 : f32
      %37 = vector.broadcast %cst_26 : f32 to vector<16x1xf32>
      %38 = arith.addf %36, %37 : vector<16x1xf32>
      %39 = math.rsqrt %38 : vector<16x1xf32>
      %40 = vector.broadcast %39 : vector<16x1xf32> to vector<16x32xf32>
      %41 = arith.mulf %31, %40 : vector<16x32xf32>
      %42 = vector.broadcast %13 : vector<1x32xf32> to vector<16x32xf32>
      %43 = arith.mulf %41, %42 : vector<16x32xf32>
      %44 = vector.broadcast %14 : vector<1x32xf32> to vector<16x32xf32>
      %45 = arith.addf %43, %44 : vector<16x32xf32>
      %c0_27 = arith.constant 0 : index
      %c0_28 = arith.constant 0 : index
      %46 = vector.load %arg10[%c0_27, %c0_28] : memref<16x32xf32, #tpu.memory_space<vmem>>, vector<16x32xf32>
      tpu.vector_store %arg10[%c0_27, %c0_28], %45 {strides = array<i32>} : memref<16x32xf32, #tpu.memory_space<vmem>>, vector<16x32xf32>,
    } else {
    }
    %c0 = arith.constant 0 : index
    %c0_1 = arith.constant 0 : index
    %3 = vector.load %arg10[%c0, %c0_1] : memref<16x32xf32, #tpu.memory_space<vmem>>, vector<16x32xf32>
    %c0_2 = arith.constant 0 : index
    %c0_3 = arith.constant 0 : index
    %4 = vector.load %arg7[%c0_2, %c0_3] : memref<128x32xf32, #tpu.memory_space<vmem>>, vector<128x32xf32>
    %cst = arith.constant dense<0.000000e+00> : vector<16x128xf32>
    %5 = tpu.matmul %3, %4, %cst {dimension_numbers = #tpu.dot_dimension_numbers<[1], [1], [0], [0], [0, 0, 1, 0], [], []>} : vector<16x32xf32>, vector<128x32xf32>, vector<16x128xf32> -> vector<16x128xf32>
    %c0_4 = arith.constant 0 : index
    %c0_5 = arith.constant 0 : index
    %6 = vector.load %arg8[%c0_4, %c0_5] : memref<1x128xf32, #tpu.memory_space<vmem>>, vector<1x128xf32>
    %7 = vector.broadcast %6 : vector<1x128xf32> to vector<16x128xf32>
    %8 = arith.addf %5, %7 : vector<16x128xf32>
    %c0_6 = arith.constant 0 : index
    %c0_7 = arith.constant 0 : index
    %9 = vector.load %arg9[%c0_6, %c0_7] : memref<16x128xf32, #tpu.memory_space<vmem>>, vector<16x128xf32>
    tpu.vector_store %arg9[%c0_6, %c0_7], %8 {strides = array<i32>} : memref<16x128xf32, #tpu.memory_space<vmem>>, vector<16x128xf32>,
    return
  }
  func.func @transform_0(%arg0: i32, %arg1: i32) -> (i32, i32) {
    %c0_i32 = arith.constant 0 : i32
    %c0_i32_0 = arith.constant 0 : i32
    return %arg0, %c0_i32 : i32, i32
  }
  func.func @transform_1(%arg0: i32, %arg1: i32) -> (i32, i32) {
    %c0_i32 = arith.constant 0 : i32
    %c0_i32_0 = arith.constant 0 : i32
    %c0_i32_1 = arith.constant 0 : i32
    return %c0_i32, %c0_i32_0 : i32, i32
  }
  func.func @transform_2(%arg0: i32, %arg1: i32) -> (i32, i32) {
    %c0_i32 = arith.constant 0 : i32
    %c0_i32_0 = arith.constant 0 : i32
    %c0_i32_1 = arith.constant 0 : i32
    return %c0_i32, %c0_i32_0 : i32, i32
  }
  func.func @transform_3(%arg0: i32, %arg1: i32) -> (i32, i32) {
    %c0_i32 = arith.constant 0 : i32
    %c0_i32_0 = arith.constant 0 : i32
    %c0_i32_1 = arith.constant 0 : i32
    return %c0_i32, %c0_i32_0 : i32, i32
  }
  func.func @transform_4(%arg0: i32, %arg1: i32) -> (i32, i32) {
    %c0_i32 = arith.constant 0 : i32
    %c0_i32_0 = arith.constant 0 : i32
    %c0_i32_1 = arith.constant 0 : i32
    return %c0_i32, %c0_i32_0 : i32, i32
  }
  func.func @transform_5(%arg0: i32, %arg1: i32) -> (i32, i32) {
    %c0_i32 = arith.constant 0 : i32
    %c0_i32_0 = arith.constant 0 : i32
    return %arg1, %c0_i32 : i32, i32
  }
  func.func @transform_6(%arg0: i32, %arg1: i32) -> (i32, i32) {
    %c0_i32 = arith.constant 0 : i32
    %c0_i32_0 = arith.constant 0 : i32
    return %c0_i32, %arg1 : i32, i32
  }
  func.func @transform_7(%arg0: i32, %arg1: i32) -> (i32, i32) {
    %c0_i32 = arith.constant 0 : i32
    return %arg0, %arg1 : i32, i32
  }
}

</mosaic_0001>

<bundles_post_ra>
// kernel: tpu_custom_call.1
= control target key start
LH: loop header
LB: loop body
LE: loop exit
PB: predicated region body
PF: predicated region fallthrough
CT: control target
= control target key end

     0   :  { %vm46_vm0 = vcmask 261120   ;;  %s750_s0 = inlined_call_operand.vmem [shape: f32[16,32], index: 0, kind: input, shape index: {}]   ;;  %s751_s1 = inlined_call_operand.vmem [shape: f32[32,32], index: 1, kind: input, shape index: {}]   ;;  %s752_s2 = inlined_call_operand.vmem [shape: f32[1,32], index: 2, kind: input, shape index: {}]   ;;  %s753_s3 = inlined_call_operand.vmem [shape: f32[1,32], index: 3, kind: input, shape index: {}]   ;;  %s754_s4 = inlined_call_operand.vmem [shape: f32[1,32], index: 4, kind: input, shape index: {}]   ;;  %s755_s5 = inlined_call_operand.vmem [shape: f32[128,32], index: 5, kind: input, shape index: {}]   ;;  %s756_s6 = inlined_call_operand.vmem [shape: f32[1,128], index: 6, kind: input, shape index: {}]   ;;  %s757_s7 = inlined_call_operand.hbm [shape: f32[16,128], index: 7, kind: output, shape index: {}]  }
   0x1   :  { %v33_v0 = vld [vmem:[%s751_s1] sm:$0xff]  ;;  %v34_v1 = vld [vmem:[%s751_s1 + $0x8] sm:$0xff]  ;;  %v35_v2 = vld [vmem:[%s751_s1 + $0x10] sm:$0xff] }
   0x2   :  { %v466_v3 = vpack.c.bf16 %v34_v1, %v33_v0  ;;  %vm615_vm1 = vmpackc.low %vm46_vm0, %vm46_vm0  ;;  %v36_v5 = vld [vmem:[%s751_s1 + $0x18] sm:$0xff]  ;;  %v31_v6 = vld [vmem:[%s750_s0] sm:$0xff] }
   0x3   :  { %v472_v7 = vpack.c.bf16 %v36_v5, %v35_v2  ;;  %428 = vmatprep.mubr.msk.f32.mxu0 %vm46_vm0, %v31_v6 }
   0x4   :  { %12 = vsyncpa [#allocation4], 0  ;;  %468 = vmatprep.subr.msk.bf16.mxu0 %vm615_vm1, %v466_v3  ;;  %v32_v8 = vld [vmem:[%s750_s0 + $0x8] sm:$0xff]  ;;  %v368_v9 = vld [vmem:[%s752_s2] ss:$0 sm:$0xff] }
   0x5   :  { %471 = vmatpush3.bf16.xpose.msk.msra.mxu0 %vm615_vm1, %v466_v3  ;;  %v197_v26 = vld [vmem:[%s755_s5] sm:$0xff]  ;;  %v198_v27 = vld [vmem:[%s755_s5 + $0x8] sm:$0xff]  ;;  %v199_v28 = vld [vmem:[%s755_s5 + $0x10] sm:$0xff] }
   0x6   :  { %474 = vmatprep.subr.msk.bf16.mxu0 %vm615_vm1, %v472_v7  ;;  %v478_v29 = vpack.c.bf16 %v198_v27, %v197_v26  ;;  %v200_v30 = vld [vmem:[%s755_s5 + $0x18] sm:$0xff]  ;;  %v201_v32 = vld [vmem:[%s755_s5 + $0x20] sm:$0xff]  ;;  %v202_v33 = vld [vmem:[%s755_s5 + $0x28] sm:$0xff] }
   0x7   :  { %v484_v31 = vpack.c.bf16 %v200_v30, %v199_v28  ;;  %v490_v34 = vpack.c.bf16 %v202_v33, %v201_v32  ;;  %v203_v35 = vld [vmem:[%s755_s5 + $0x30] sm:$0xff]  ;;  %v204_v36 = vld [vmem:[%s755_s5 + $0x38] sm:$0xff]  ;;  %v205_v48 = vld [vmem:[%s755_s5 + $0x40] sm:$0xff] }
   0x8   :  { %480 = vmatprep.subr.msk.bf16.mxu1 %vm615_vm1, %v478_v29  ;;  %v496_v37 = vpack.c.bf16 %v204_v36, %v203_v35  ;;  %v206_v49 = vld [vmem:[%s755_s5 + $0x48] sm:$0xff]  ;;  %v207_v51 = vld [vmem:[%s755_s5 + $0x50] sm:$0xff]  ;;  %v208_v52 = vld [vmem:[%s755_s5 + $0x58] sm:$0xff] }
   0x9   :  { %483 = vmatpush3.bf16.xpose.msk.msra.mxu1 %vm615_vm1, %v478_v29  ;;  %v502_v50 = vpack.c.bf16 %v206_v49, %v205_v48  ;;  %v508_v53 = vpack.c.bf16 %v208_v52, %v207_v51  ;;  %v209_v54 = vld [vmem:[%s755_s5 + $0x60] sm:$0xff]  ;;  %v210_v55 = vld [vmem:[%s755_s5 + $0x68] sm:$0xff]  ;;  %v211_v57 = vld [vmem:[%s755_s5 + $0x70] sm:$0xff] }
   0xa   :  { %486 = vmatprep.subr.msk.bf16.mxu1 %vm615_vm1, %v484_v31  ;;  %v514_v56 = vpack.c.bf16 %v210_v55, %v209_v54  ;;  %v212_v58 = vld [vmem:[%s755_s5 + $0x78] sm:$0xff]  ;;  %v375_v3 = vld [vmem:[%s753_s3] ss:$0 sm:$0xff] }
   0xb   :  { %v520_v59 = vpack.c.bf16 %v212_v58, %v211_v57  ;;  %v376_v6 = vld [vmem:[%s754_s4] ss:$0 sm:$0xff]  ;;  %s561_s4 = smov [#allocation3]  }
   0xc   :  { %s357_s22 = sshll.u32 %s561_s4, 4  ;;  %s358_s22 = int_to_ptr.vmem [resolvable:$true] %s357_s22 }
   0xd   :  { %477 = vmatpush3.bf16.xpose.msk.msra.mxu0 %vm615_vm1, %v472_v7  ;;  %s537_s23 = scalar_lea.vmem %s358_s22, 256  ;;  %p542_p1 = scmp.lt.s32.totalorder %s358_s22, %s358_s22 }
   0xe   :  { %p538_p0 = scmp.ne.s32.totalorder %s358_s22, %s537_s23  ;;  %p543_p2 = scmp.lt.s32.totalorder %s537_s23, %s537_s23 }
  0x10   :  { %p544_p3 = por %p543_p2, %p542_p1 }
  0x11   :  { %489 = vmatpush3.bf16.xpose.msk.msra.mxu1 %vm615_vm1, %v484_v31 }
  0x12   :  { %492 = vmatprep.subr.msk.bf16.mxu1 %vm615_vm1, %v490_v34  ;;  %p545_p4 = pnand %p544_p3, %p538_p0 }
  0x14   :  { %429 = vmatmul.mubr.msk.f32.vlgmr.msra.gmra.mrb[0].mxu0 %vm46_vm0, %v32_v8 }
  0x19   :  { %495 = vmatpush3.bf16.xpose.msk.msra.mxu1 %vm615_vm1, %v490_v34 }
  0x1a   :  { %498 = vmatprep.subr.msk.bf16.mxu1 %vm615_vm1, %v496_v37 }
  0x21   :  { %501 = vmatpush3.bf16.xpose.msk.msra.mxu1 %vm615_vm1, %v496_v37 }
  0x22   :  { %504 = vmatprep.subr.msk.bf16.mxu1 %vm615_vm1, %v502_v50 }
  0x29   :  { %507 = vmatpush3.bf16.xpose.msk.msra.mxu1 %vm615_vm1, %v502_v50 }
  0x2a   :  { %510 = vmatprep.subr.msk.bf16.mxu1 %vm615_vm1, %v508_v53 }
  0x31   :  { %513 = vmatpush3.bf16.xpose.msk.msra.mxu1 %vm615_vm1, %v508_v53 }
  0x32   :  { %516 = vmatprep.subr.msk.bf16.mxu1 %vm615_vm1, %v514_v56 }
  0x39   :  { %519 = vmatpush3.bf16.xpose.msk.msra.mxu1 %vm615_vm1, %v514_v56 }
  0x3a   :  { %522 = vmatprep.subr.msk.bf16.mxu1 %vm615_vm1, %v520_v59 }
  0x41   :  { %525 = vmatpush3.bf16.xpose.msk.msra.mxu1 %vm615_vm1, %v520_v59 }
  0xe7   :  { %v430_v10 = vpop.f32.mrb[0].mxu0 }
  0xe8   :  { %v137_v11 = vadd.f32 %v430_v10, %v368_v9  ;;  %v131_v12 = vpop.f32.mrb[1].mxu0 }
  0xe9   :  { %v132_v13 = vadd.f32 %v368_v9, %v131_v12 }
  0xea   :  { %v143_v14 = vmul.f32 0.70710677, %v137_v11  ;;  %v141_v21 = vmul.f32 0.5, %v137_v11 }
  0xeb   :  { %v142_v15 = vmul.f32 0.70710677, %v132_v13  ;;  %v140_v18 = vmul.f32 0.5, %v132_v13 }
  0xec   :  { %529 = verf.f32 %v143_v14  ;;  %v377_v14 = vld [vmem:[%s756_s6] ss:$0 sm:$0xff] }
  0xed   :  { %531 = verf.f32 %v142_v15 }
  0xf6   :  { %v530_v16 = vpop.eup %529 }
  0xf7   :  { %v532_v17 = vpop.eup %531  ;;  %v147_v20 = vadd.f32 1.0, %v530_v16 }
  0xf8   :  { %v146_v19 = vadd.f32 1.0, %v532_v17 }
  0xf9   :  { %v149_v24 = vmul.f32 %v147_v20, %v141_v21 }
  0xfa   :  { %v148_v22 = vmul.f32 %v146_v19, %v140_v18 }
  0xfb   :  { %v153_v25 = vsel %vm46_vm0, %v149_v24, 0.0 }
  0xfc   :  { %v150_v23 = vsel %vm46_vm0, %v148_v22, 0.0 }
  0xfd   :  { %151 = vadd.xlane.f32.xlu0 %v150_v23 }
 0x101   :  { %154 = vadd.xlane.f32.xlu0 %v153_v25 }
 0x18a   :  { %v152_v38 = vpop.xlane.xlu0 %151 }
 0x18b   :  { %v157_v39 = vmul.f32 0.03125, %v152_v38 }
 0x18d   :  { %v159_v40 = vsub.f32 %v148_v22, %v157_v39 }
 0x18e   :  { %v155_v41 = vpop.xlane.xlu0 %154 }
 0x18f   :  { %v158_v42 = vmul.f32 0.03125, %v155_v41  ;;  %v161_v43 = vmul.f32 %v159_v40, %v159_v40 }
 0x191   :  { %v160_v44 = vsub.f32 %v149_v24, %v158_v42  ;;  %v163_v45 = vsel %vm46_vm0, %v161_v43, 0.0 }
 0x192   :  { %164 = vadd.xlane.f32.xlu1 %v163_v45 }
 0x193   :  { %v162_v46 = vmul.f32 %v160_v44, %v160_v44 }
 0x195   :  { %v166_v47 = vsel %vm46_vm0, %v162_v46, 0.0 }
 0x196   :  { %167 = vadd.xlane.f32.xlu1 %v166_v47 }
 0x21f   :  { %v165_v60 = vpop.xlane.xlu1 %164 }
 0x220   :  { %v169_v61 = vmul.f32 0.03125, %v165_v60 }
 0x222   :  { %v171_v62 = vadd.f32 1e-12, %v169_v61 }
 0x223   :  { %v168_v63 = vpop.xlane.xlu1 %167 }
 0x224   :  { %533 = vrsqrt.f32 %v171_v62  ;;  %v170_v0 = vmul.f32 0.03125, %v168_v63 }
 0x226   :  { %v172_v1 = vadd.f32 1e-12, %v170_v0 }
 0x228   :  { %535 = vrsqrt.f32 %v172_v1 }
 0x22e   :  { %v534_v2 = vpop.eup %533 }
 0x22f   :  { %v175_v5 = vmul.f32 %v534_v2, %v159_v40 }
 0x231   :  { %v183_v4 = vmul.f32 %v375_v3, %v175_v5 }
 0x232   :  { %v536_v7 = vpop.eup %535 }
 0x233   :  { %v191_v8 = vadd.f32 %v376_v6, %v183_v4  ;;  %v176_v9 = vmul.f32 %v536_v7, %v160_v44 }
 0x235   :  { %193 = vst.msk [vmem:[#allocation2] sm:$0xff] %vm46_vm0, %v191_v8  ;;  %v184_v10 = vmul.f32 %v375_v3, %v176_v9 }
 0x237   :  { %v192_v11 = vadd.f32 %v376_v6, %v184_v10 }
 0x239   :  { %194 = vst.msk [vmem:[#allocation2 + $0x8] sm:$0xff] %vm46_vm0, %v192_v11 }
 0x23c   :  { %v195_v12 = vld [vmem:[#allocation2] sm:$0xff] }
 0x23d   :  { %463 = vmatprep.mubr.msk.f32.mxu1 %vm46_vm0, %v195_v12 }
 0x240   :  { %v196_v13 = vld [vmem:[#allocation2 + $0x8] sm:$0xff] }
 0x241   :  { %464 = vmatmul.mubr.msk.f32.vlgmr.msra.gmra.mrb[0].mxu1 %vm46_vm0, %v196_v13 }
 0x314   :  { %v465_v15 = vpop.f32.mrb[0].mxu1 }
 0x315   :  { %v347_v16 = vadd.f32 %v465_v15, %v377_v14  ;;  %v341_v17 = vpop.f32.mrb[1].mxu1 }
 0x316   :  { %v342_v18 = vadd.f32 %v377_v14, %v341_v17 }
 0x317   :  { %351 = vst [vmem:[#allocation3 + $0x8] sm:$0xff] %v347_v16 }
 0x318   :  { %350 = vst [vmem:[#allocation3] sm:$0xff] %v342_v18 }
 0x319   :  { %548 = shalt.err (!%p545_p4)
}
 0x31a   :  { %s549_s6 = scalar_lea.hbm %s757_s7, 256 }
 0x31b   :  { %p550_p5 = scmp.ne.s32.totalorder %s757_s7, %s549_s6  ;;  %p553_p6 = scmp.lt.u32.totalorder %s549_s6, %s757_s7 }
 0x31d   :  { %p555_p7 = pnand %p553_p6, %p550_p5 }
 0x31f   :  { %558 = shalt.err (!%p555_p7)
}
 0x320   :  { %s562_s30 = smov 128   ;;  %s563_s8 = smov 8  }
 0x321   :  { %363 = dma.vmem_to_hbm [thread:$0]  %s358_s22, 256, %s757_s7, [#allocation4], %s562_s30, %s562_s30, %s563_s8  }
 0x322   :  { %559 = dma.done.wait [#allocation4], 256  }
 0x323   :  { %560 = vsyncadd [#allocation4], 4294967040 }
 0x324   :  { %367 = vsyncpa [#allocation4], 1 }

</bundles_post_ra>
